<compile_context>
chip_gen: v6e
topology: v6e:2x2x1
jax: 0.10.0
libtpu: 0.0.40
codegen_flags: <defaults>
</compile_context>

<pallas_src>
import functools

import jax
import jax.numpy as jnp
from jax import lax
from jax.experimental import pallas as pl
from jax.experimental.pallas import tpu as pltpu


def _round_up(x, m):
    return ((x + m - 1) // m) * m


def _vmem_capacity_bytes():
    try:
        return int(pltpu.get_tpu_info().vmem_capacity_bytes)
    except Exception:
        return 64 * 1024 * 1024   # conservative (v7x-sized) fallback


def _contrastive_kernel(pred_ref, true_cls_ref, true_diag_ref, cmask_ref,
                        out_ref, m_sc, l_sc, *, apply_class_mask):
    """One (row-tile, class-tile) grid step of the pairwise CE loss.

    pred_ref     : (tm, e_p)    row tile of predicted embeddings (native dtype)
    true_cls_ref : (tc, e_p)    class tile of true embeddings (softmax classes)
    true_diag_ref: (tm, e_p)    row tile of true embeddings matching pred rows
    cmask_ref    : (1, tc) f32  additive mask (0 real class / -1e30 padding)
    out_ref      : (tm, 1) f32  per-row loss (logsumexp - diag), last class step
    m_sc, l_sc   : (tm, 1) f32  running max / running sum for streaming LSE
    """
    j = pl.program_id(1)

    @pl.when(j == 0)
    def _init():
        m_sc[...] = jnp.full_like(m_sc, -jnp.inf)
        l_sc[...] = jnp.zeros_like(l_sc)

    pred = pred_ref[...]                       # native dtype -> MXU fast path

    # sim[r, c] = <pred[r], true[c]>: contract last dims of both operands
    # (no transpose of `true`), accumulate in f32 on the MXU.
    sim = lax.dot_general(
        pred, true_cls_ref[...],
        dimension_numbers=(((1,), (1,)), ((), ())),
        preferred_element_type=jnp.float32)    # (tm, tc)

    if apply_class_mask:                       # static: only if padding exists
        sim = sim + cmask_ref[...]             # additive {0, -1e30} mask row

    # Online (streaming) logsumexp update over class tiles.
    m_prev = m_sc[...]
    m_new = jnp.maximum(m_prev, jnp.max(sim, axis=-1, keepdims=True))
    l_sc[...] = (jnp.exp(m_prev - m_new) * l_sc[...]
                 + jnp.sum(jnp.exp(sim - m_new), axis=-1, keepdims=True))
    m_sc[...] = m_new

    @pl.when(j == pl.num_programs(1) - 1)
    def _finalize():
        # Diagonal sim[g, g] via a row-wise dot on the input tiles (cheap VPU
        # work; the matching rows of `true` arrive via their own BlockSpec).
        diag = jnp.sum(pred.astype(jnp.float32)
                       * true_diag_ref[...].astype(jnp.float32),
                       axis=-1, keepdims=True)                     # (tm, 1)
        out_ref[...] = (m_sc[...] + jnp.log(l_sc[...])) - diag


def _select_tiles(bs, e_p, itemsize, packing, budget):
    """Pick (row tile tm, class tile tc) fitting the per-chip VMEM budget."""
    def vmem_need(tm, tc):
        return (2 * tm * e_p * itemsize        # pred row tile (double-buffered)
                + 2 * tc * e_p * itemsize      # true class tile (double-buffered)
                + 2 * tm * e_p * itemsize      # true diag tile (double-buffered)
                + 2 * tc * 4                   # additive class-mask tile
                + 3 * tm * tc * 4              # f32 sim + exp temporaries
                + 4 * tm * 4                   # m / l scratch
                + 2 * tm * 4                   # per-row output tile
                + (1 << 16))

    tm_max = min(512, max(packing, _round_up(bs, packing)))
    tm_opts = [tm_max] + [t for t in (256, 128, 64, 32, 16, 8)
                          if t % packing == 0 and t < tm_max]

    tc_resident = _round_up(bs, 128)           # minimal, lane-dense class pad
    # Preferred path: whole class dim resident (single class tile), largest tm.
    for tm in tm_opts:
        need = vmem_need(tm, tc_resident)
        if need <= budget:
            return tm, tc_resident, need
    # Otherwise: stream class tiles with the online logsumexp.
    for tm in tm_opts:
        for tc in (2048, 1024, 512, 256, 128):
            need = vmem_need(tm, tc)
            if tc <= tc_resident and need <= budget:
                return tm, tc, need
    # Fall back to the smallest tiles; let the compiler's allocator decide.
    tm, tc = tm_opts[-1], 128
    return tm, tc, vmem_need(tm, tc)


def contrastive_pairwise_embedding_loss(embeddings_pred, embeddings_true,
                                        margin=1.0, reduction="mean"):
    """Pallas-backed equivalent of ContrastivePairwiseEmbeddingLoss.forward.

    `margin` is unused by the reference forward pass (signature parity only).
    Supports reduction in {'mean', 'sum', 'none'} (final reduce in the wrapper).
    """
    reduction = reduction or "none"
    bs, e = embeddings_pred.shape
    assert embeddings_true.shape == (bs, e)

    dtype = embeddings_pred.dtype
    itemsize = jnp.dtype(dtype).itemsize
    packing = max(8, 32 // itemsize)           # sublanes: 8 f32, 16 bf16, 32 i8
    e_p = _round_up(e, 128)                    # lane-dense operands

    cap = _vmem_capacity_bytes()               # chip-aware: 64 MiB v7x, 128 v5e/v6e
    budget = max(cap - (16 << 20), 8 << 20)    # leave headroom for the compiler
    tm, tc, need = _select_tiles(bs, e_p, itemsize, packing, budget)

    grid_m = pl.cdiv(bs, tm)
    grid_c = pl.cdiv(bs, tc)
    bs_row_p = grid_m * tm                     # pred rows padded to the row tile
    bs_cls_p = grid_c * tc                     # classes padded to the class tile
    rows_true = max(bs_row_p, bs_cls_p)        # one padded copy serves both views

    pred_p = embeddings_pred
    if (bs_row_p, e_p) != (bs, e):
        pred_p = jnp.pad(embeddings_pred, ((0, bs_row_p - bs), (0, e_p - e)))
    true_p = embeddings_true
    if (rows_true, e_p) != (bs, e):
        true_p = jnp.pad(embeddings_true, ((0, rows_true - bs), (0, e_p - e)))

    apply_class_mask = bs_cls_p != bs
    cmask = jnp.where(jnp.arange(bs_cls_p, dtype=jnp.int32) < bs,
                      jnp.float32(0.0), jnp.float32(-1e30)).reshape(1, bs_cls_p)

    vmem_limit = int(max(min(2 * need + (4 << 20), cap - (8 << 20)), 16 << 20))

    cost = pl.CostEstimate(
        flops=2 * bs_row_p * bs_cls_p * e_p + 2 * bs_row_p * e_p,
        transcendentals=bs_row_p * bs_cls_p + bs_row_p,
        bytes_accessed=(pred_p.size * itemsize
                        + true_p.size * itemsize * (1 if grid_c == 1 else grid_m + 1)
                        + cmask.size * 4 + bs_row_p * 4),
    )

    kernel = functools.partial(_contrastive_kernel,
                               apply_class_mask=apply_class_mask)

    per_row = pl.pallas_call(
        kernel,
        out_shape=jax.ShapeDtypeStruct((bs_row_p, 1), jnp.float32),
        grid_spec=pltpu.PrefetchScalarGridSpec(
            num_scalar_prefetch=0,
            grid=(grid_m, grid_c),
            in_specs=[
                pl.BlockSpec((tm, e_p), lambda i, j: (i, 0)),   # pred row tile
                pl.BlockSpec((tc, e_p), lambda i, j: (j, 0)),   # true class tile
                pl.BlockSpec((tm, e_p), lambda i, j: (i, 0)),   # true diag rows
                pl.BlockSpec((1, tc), lambda i, j: (0, j)),     # class mask row
            ],
            out_specs=pl.BlockSpec((tm, 1), lambda i, j: (i, 0)),
            scratch_shapes=[pltpu.VMEM((tm, 1), jnp.float32),   # running max
                            pltpu.VMEM((tm, 1), jnp.float32)],  # running sum
        ),
        compiler_params=pltpu.CompilerParams(
            dimension_semantics=("parallel", "arbitrary"),
            vmem_limit_bytes=vmem_limit,
        ),
        cost_estimate=cost,
    )(pred_p, true_p, true_p, cmask)

    per_row = per_row[:bs, 0]
    if reduction == "mean":
        return jnp.mean(per_row)
    if reduction == "sum":
        return jnp.sum(per_row)
    return per_row                                               # 'none'


def _reference_loss(pred, true):
    sim = jnp.einsum("se,ae->sa", pred.astype(jnp.float32),
                     true.astype(jnp.float32),
                     precision=lax.Precision.HIGHEST)
    logp = jax.nn.log_softmax(sim, axis=-1)
    n = pred.shape[0]
    return -jnp.mean(logp[jnp.arange(n), jnp.arange(n)])


if __name__ == "__main__":
    key = jax.random.PRNGKey(0)
    k1, k2 = jax.random.split(key)
    bs, emb = 8, 32
    embeddings_pred = jax.random.normal(k1, (bs, emb), dtype=jnp.float32)
    embeddings_true = jax.random.normal(k2, (bs, emb), dtype=jnp.float32)

    loss = contrastive_pairwise_embedding_loss(embeddings_pred, embeddings_true)
    loss = jax.block_until_ready(loss)

    ref = _reference_loss(embeddings_pred, embeddings_true)
    assert jnp.allclose(loss, ref, rtol=1e-4, atol=1e-4), (loss, ref)

    print("KERNEL_OK")
</pallas_src>

<mosaic_0001>
module attributes {stable_mosaic.version = 11 : i64} {
  func.func @_contrastive_kernel(%arg0: i32, %arg1: i32, %arg2: memref<8x128xf32, #tpu.memory_space<vmem>>, %arg3: memref<128x128xf32, #tpu.memory_space<vmem>>, %arg4: memref<8x128xf32, #tpu.memory_space<vmem>>, %arg5: memref<1x128xf32, #tpu.memory_space<vmem>>, %arg6: memref<8x1xf32, #tpu.memory_space<vmem>>, %arg7: memref<8x1xf32, #tpu.memory_space<vmem>>, %arg8: memref<8x1xf32, #tpu.memory_space<vmem>>) attributes {dimension_semantics = [#tpu.dimension_semantics<parallel>, #tpu.dimension_semantics<arbitrary>], iteration_bounds = array<i64: 1, 1>, scalar_prefetch = 0 : i64, scratch_operands = 2 : i64, tpu.core_type = #tpu.core_type<tc>, window_params = [{transform_indices = @transform_0, window_bounds = array<i64: 8, 128>}, {transform_indices = @transform_1, window_bounds = array<i64: 128, 128>}, {transform_indices = @transform_2, window_bounds = array<i64: 8, 128>}, {transform_indices = @transform_3, window_bounds = array<i64: 1, 128>}, {transform_indices = @transform_4, window_bounds = array<i64: 8, 1>}]} {
    %c0_i32 = arith.constant 0 : i32
    %0 = arith.cmpi eq, %arg1, %c0_i32 : i32
    %1 = arith.extui %0 : i1 to i32
    %c0_i32_0 = arith.constant 0 : i32
    %2 = arith.cmpi ne, %1, %c0_i32_0 : i32
    scf.if %2 {
      %cst_18 = arith.constant 0xFF800000 : f32
      %28 = vector.broadcast %cst_18 : f32 to vector<8x1xf32>
      %c0_19 = arith.constant 0 : index
      %c0_20 = arith.constant 0 : index
      %29 = vector.load %arg7[%c0_19, %c0_20] : memref<8x1xf32, #tpu.memory_space<vmem>>, vector<8x1xf32>
      tpu.vector_store %arg7[%c0_19, %c0_20], %28 {strides = array<i32>} : memref<8x1xf32, #tpu.memory_space<vmem>>, vector<8x1xf32>,
      %cst_21 = arith.constant 0.000000e+00 : f32
      %30 = vector.broadcast %cst_21 : f32 to vector<8x1xf32>
      %c0_22 = arith.constant 0 : index
      %c0_23 = arith.constant 0 : index
      %31 = vector.load %arg8[%c0_22, %c0_23] : memref<8x1xf32, #tpu.memory_space<vmem>>, vector<8x1xf32>
      tpu.vector_store %arg8[%c0_22, %c0_23], %30 {strides = array<i32>} : memref<8x1xf32, #tpu.memory_space<vmem>>, vector<8x1xf32>,
    } else {
    }
    %c0 = arith.constant 0 : index
    %c0_1 = arith.constant 0 : index
    %3 = vector.load %arg2[%c0, %c0_1] : memref<8x128xf32, #tpu.memory_space<vmem>>, vector<8x128xf32>
    %c0_2 = arith.constant 0 : index
    %c0_3 = arith.constant 0 : index
    %4 = vector.load %arg3[%c0_2, %c0_3] : memref<128x128xf32, #tpu.memory_space<vmem>>, vector<128x128xf32>
    %cst = arith.constant dense<0.000000e+00> : vector<8x128xf32>
    %5 = tpu.matmul %3, %4, %cst {dimension_numbers = #tpu.dot_dimension_numbers<[1], [1], [0], [0], [0, 0, 1, 0], [], []>} : vector<8x128xf32>, vector<128x128xf32>, vector<8x128xf32> -> vector<8x128xf32>
    %c0_4 = arith.constant 0 : index
    %c0_5 = arith.constant 0 : index
    %6 = vector.load %arg5[%c0_4, %c0_5] : memref<1x128xf32, #tpu.memory_space<vmem>>, vector<1x128xf32>
    %7 = vector.broadcast %6 : vector<1x128xf32> to vector<8x128xf32>
    %8 = arith.addf %5, %7 : vector<8x128xf32>
    %c0_6 = arith.constant 0 : index
    %c0_7 = arith.constant 0 : index
    %9 = vector.load %arg7[%c0_6, %c0_7] : memref<8x1xf32, #tpu.memory_space<vmem>>, vector<8x1xf32>
    %cst_8 = arith.constant dense<0xFF800000> : vector<8xf32>
    %10 = vector.multi_reduction <maximumf>, %8, %cst_8 [1] : vector<8x128xf32> to vector<8xf32>
    %11 = vector.shape_cast %10 : vector<8xf32> to vector<8x1xf32>
    %12 = arith.maximumf %9, %11 : vector<8x1xf32>
    %13 = arith.subf %9, %12 : vector<8x1xf32>
    %14 = math.exp %13 : vector<8x1xf32>
    %c0_9 = arith.constant 0 : index
    %c0_10 = arith.constant 0 : index
    %15 = vector.load %arg8[%c0_9, %c0_10] : memref<8x1xf32, #tpu.memory_space<vmem>>, vector<8x1xf32>
    %16 = arith.mulf %14, %15 : vector<8x1xf32>
    %17 = vector.broadcast %12 : vector<8x1xf32> to vector<8x128xf32>
    %18 = arith.subf %8, %17 : vector<8x128xf32>
    %19 = math.exp %18 : vector<8x128xf32>
    %cst_11 = arith.constant dense<0.000000e+00> : vector<8xf32>
    %20 = vector.multi_reduction <add>, %19, %cst_11 [1] : vector<8x128xf32> to vector<8xf32>
    %21 = vector.shape_cast %20 : vector<8xf32> to vector<8x1xf32>
    %22 = arith.addf %16, %21 : vector<8x1xf32>
    %c0_12 = arith.constant 0 : index
    %c0_13 = arith.constant 0 : index
    %23 = vector.load %arg8[%c0_12, %c0_13] : memref<8x1xf32, #tpu.memory_space<vmem>>, vector<8x1xf32>
    tpu.vector_store %arg8[%c0_12, %c0_13], %22 {strides = array<i32>} : memref<8x1xf32, #tpu.memory_space<vmem>>, vector<8x1xf32>,
    %c0_14 = arith.constant 0 : index
    %c0_15 = arith.constant 0 : index
    %24 = vector.load %arg7[%c0_14, %c0_15] : memref<8x1xf32, #tpu.memory_space<vmem>>, vector<8x1xf32>
    tpu.vector_store %arg7[%c0_14, %c0_15], %12 {strides = array<i32>} : memref<8x1xf32, #tpu.memory_space<vmem>>, vector<8x1xf32>,
    %c0_i32_16 = arith.constant 0 : i32
    %25 = arith.cmpi eq, %arg1, %c0_i32_16 : i32
    %26 = arith.extui %25 : i1 to i32
    %c0_i32_17 = arith.constant 0 : i32
    %27 = arith.cmpi ne, %26, %c0_i32_17 : i32
    scf.if %27 {
      %c0_18 = arith.constant 0 : index
      %c0_19 = arith.constant 0 : index
      %28 = vector.load %arg4[%c0_18, %c0_19] : memref<8x128xf32, #tpu.memory_space<vmem>>, vector<8x128xf32>
      %29 = arith.mulf %3, %28 : vector<8x128xf32>
      %cst_20 = arith.constant dense<0.000000e+00> : vector<8xf32>
      %30 = vector.multi_reduction <add>, %29, %cst_20 [1] : vector<8x128xf32> to vector<8xf32>
      %31 = vector.shape_cast %30 : vector<8xf32> to vector<8x1xf32>
      %c0_21 = arith.constant 0 : index
      %c0_22 = arith.constant 0 : index
      %32 = vector.load %arg7[%c0_21, %c0_22] : memref<8x1xf32, #tpu.memory_space<vmem>>, vector<8x1xf32>
      %c0_23 = arith.constant 0 : index
      %c0_24 = arith.constant 0 : index
      %33 = vector.load %arg8[%c0_23, %c0_24] : memref<8x1xf32, #tpu.memory_space<vmem>>, vector<8x1xf32>
      %34 = math.log %33 : vector<8x1xf32>
      %35 = arith.addf %32, %34 : vector<8x1xf32>
      %36 = arith.subf %35, %31 : vector<8x1xf32>
      %c0_25 = arith.constant 0 : index
      %c0_26 = arith.constant 0 : index
      %37 = vector.load %arg6[%c0_25, %c0_26] : memref<8x1xf32, #tpu.memory_space<vmem>>, vector<8x1xf32>
      tpu.vector_store %arg6[%c0_25, %c0_26], %36 {strides = array<i32>} : memref<8x1xf32, #tpu.memory_space<vmem>>, vector<8x1xf32>,
    } else {
    }
    return
  }
  func.func @transform_0(%arg0: i32, %arg1: i32) -> (i32, i32) {
    %c0_i32 = arith.constant 0 : i32
    %c0_i32_0 = arith.constant 0 : i32
    return %arg0, %c0_i32 : i32, i32
  }
  func.func @transform_1(%arg0: i32, %arg1: i32) -> (i32, i32) {
    %c0_i32 = arith.constant 0 : i32
    %c0_i32_0 = arith.constant 0 : i32
    return %arg1, %c0_i32 : i32, i32
  }
  func.func @transform_2(%arg0: i32, %arg1: i32) -> (i32, i32) {
    %c0_i32 = arith.constant 0 : i32
    %c0_i32_0 = arith.constant 0 : i32
    return %arg0, %c0_i32 : i32, i32
  }
  func.func @transform_3(%arg0: i32, %arg1: i32) -> (i32, i32) {
    %c0_i32 = arith.constant 0 : i32
    %c0_i32_0 = arith.constant 0 : i32
    return %c0_i32, %arg1 : i32, i32
  }
  func.func @transform_4(%arg0: i32, %arg1: i32) -> (i32, i32) {
    %c0_i32 = arith.constant 0 : i32
    %c0_i32_0 = arith.constant 0 : i32
    return %arg0, %c0_i32 : i32, i32
  }
}

</mosaic_0001>

<bundles_post_ra>
// kernel: tpu_custom_call.1
= control target key start
LH: loop header
LB: loop body
LE: loop exit
PB: predicated region body
PF: predicated region fallthrough
CT: control target
= control target key end

     0   :  { %9 = vsyncpa [#allocation5], 0  ;;  %s385_s0 = inlined_call_operand.hbm [shape: f32[8,128], index: 0, kind: input, shape index: {}]   ;;  %s386_s1 = inlined_call_operand.hbm [shape: f32[128,128], index: 1, kind: input, shape index: {}]   ;;  %s387_s2 = inlined_call_operand.hbm [shape: f32[128,128], index: 2, kind: input, shape index: {}]   ;;  %s388_s3 = inlined_call_operand.vmem [shape: f32[1,128], index: 3, kind: input, shape index: {}]   ;;  %s389_s4 = inlined_call_operand.vmem [shape: f32[8,1], index: 4, kind: output, shape index: {}]  }
   0x1   :  { %10 = vsyncpa [#allocation7], 0  ;;  %s331_s15 = smov [#allocation6]  }
   0x2   :  { %s26_s16 = sshll.u32 %s331_s15, 4  ;;  %s27_s16 = int_to_ptr.vmem [resolvable:$true] %s26_s16 }
   0x3   :  { %s275_s17 = scalar_lea.vmem %s27_s16, 2048  ;;  %p280_p1 = scmp.lt.s32.totalorder %s27_s16, %s27_s16 }
   0x4   :  { %p276_p0 = scmp.ne.s32.totalorder %s27_s16, %s275_s17  ;;  %p281_p2 = scmp.lt.s32.totalorder %s275_s17, %s275_s17 }
   0x6   :  { %p282_p3 = por %p281_p2, %p280_p1 }
   0x8   :  { %p283_p4 = pnand %p282_p3, %p276_p0 }
   0xa   :  { %286 = shalt.err (!%p283_p4)
}
   0xb   :  { %s332_s18 = smov 128   ;;  %s333_s19 = smov 8  }
   0xc   :  { %32 = dma.hbm_to_vmem [thread:$0]  %s386_s1, 2048, %s27_s16, [#allocation7], %s332_s18, %s332_s18, %s333_s19  }
   0xd   :  { %s334_s22 = smov [#allocation4]   ;;  %s335_s24 = smov [#allocation8]  }
   0xe   :  { %s17_s23 = sshll.u32 %s334_s22, 4  ;;  %s39_s25 = sshll.u32 %s335_s24, 4  ;;  %s18_s23 = int_to_ptr.vmem [resolvable:$true] %s17_s23  ;;  %s40_s25 = int_to_ptr.vmem [resolvable:$true] %s39_s25 }
   0xf   :  { %s295_s26 = scalar_lea.vmem %s18_s23, 128  ;;  %p300_p6 = scmp.lt.s32.totalorder %s18_s23, %s18_s23 }
  0x10   :  { %p296_p5 = scmp.ne.s32.totalorder %s18_s23, %s295_s26  ;;  %p301_p7 = scmp.lt.s32.totalorder %s295_s26, %s295_s26 }
  0x12   :  { %p302_p8 = por %p301_p7, %p300_p6 }
  0x14   :  { %p303_p9 = pnand %p302_p8, %p296_p5 }
  0x16   :  { %306 = shalt.err (!%p303_p9)
}
  0x17   :  { %20 = dma.hbm_to_vmem [thread:$0]  %s385_s0, 128, %s18_s23, [#allocation5]  }
  0x18   :  { %s315_s29 = scalar_lea.vmem %s40_s25, 128  ;;  %p320_p11 = scmp.lt.s32.totalorder %s40_s25, %s40_s25 }
  0x19   :  { %p316_p10 = scmp.ne.s32.totalorder %s40_s25, %s315_s29  ;;  %p321_p12 = scmp.lt.s32.totalorder %s315_s29, %s315_s29 }
  0x1b   :  { %p322_p13 = por %p321_p12, %p320_p11 }
  0x1d   :  { %p323_p0 = pnand %p322_p13, %p316_p10 }
  0x1f   :  { %326 = shalt.err (!%p323_p0)
}
  0x20   :  { %42 = dma.hbm_to_vmem [thread:$0]  %s387_s2, 128, %s40_s25, [#allocation7]  }
  0x21   :  { %327 = dma.done.wait [#allocation5], 128  }
  0x22   :  { %328 = vsyncadd [#allocation5], 4294967168 }
  0x23   :  { %329 = dma.done.wait [#allocation7], 2176  }
  0x24   :  { %330 = vsyncadd [#allocation7], 4294965120  ;;  %v336_v0 = vmov 0.0   ;;  %vm337_vm0 = vmmov 0   ;;  %v77_v1 = vld [vmem:[#allocation6 + $0x78] sm:$0xff]  ;;  %v76_v2 = vld [vmem:[#allocation6 + $0x70] sm:$0xff] }
  0x25   :  { %216 = vmatprep.subr.mxu0 %v336_v0  ;;  %248 = vmatprep.mubr.msk.f32.mxu0 %vm337_vm0, %v336_v0  ;;  %v75_v3 = vld [vmem:[#allocation6 + $0x68] sm:$0xff]  ;;  %v74_v4 = vld [vmem:[#allocation6 + $0x60] sm:$0xff]  ;;  %v73_v5 = vld [vmem:[#allocation6 + $0x58] sm:$0xff]  ;;  %vm58_vm1 = vcmask 7168   ;;  %v338_v18 = vmov -inf   ;;  %v339_v23 = vmov 0  }
  0x26   :  { %217 = vmatpush3.xpose.msra.mxu0 %v77_v1  ;;  %v72_v6 = vld [vmem:[#allocation6 + $0x50] sm:$0xff]  ;;  %v71_v7 = vld [vmem:[#allocation6 + $0x48] sm:$0xff]  ;;  %v70_v8 = vld [vmem:[#allocation6 + $0x40] sm:$0xff]  ;;  %59 = vst.msk [vmem:[#allocation2] sm:$0xff] %vm58_vm1, %v338_v18  ;;  %260 = vset.pattern.permute.xlu0 %v339_v23 }
  0x27   :  { %218 = vmatprep.subr.mxu0 %v336_v0  ;;  %v69_v9 = vld [vmem:[#allocation6 + $0x38] sm:$0xff]  ;;  %v68_v10 = vld [vmem:[#allocation6 + $0x30] sm:$0xff]  ;;  %v67_v11 = vld [vmem:[#allocation6 + $0x28] sm:$0xff]  ;;  %60 = vst.msk [vmem:[#allocation3] sm:$0xff] %vm58_vm1, %v336_v0 }
  0x28   :  { %v66_v12 = vld [vmem:[#allocation6 + $0x20] sm:$0xff]  ;;  %v65_v13 = vld [vmem:[#allocation6 + $0x18] sm:$0xff]  ;;  %v64_v14 = vld [vmem:[#allocation6 + $0x10] sm:$0xff] }
  0x29   :  { %v63_v15 = vld [vmem:[#allocation6 + $0x8] sm:$0xff]  ;;  %v62_v16 = vld [vmem:[#allocation6] sm:$0xff]  ;;  %v61_v17 = vld [vmem:[#allocation4] sm:$0xff] }
  0x2a   :  { %219 = vmatpush3.xpose.msra.mxu0 %v76_v2  ;;  %v198_v19 = vld [vmem:[%s388_s3] ss:$0 sm:$0xff]  ;;  %v181_v31 = vld [vmem:[#allocation8] sm:$0xff] }
  0x2b   :  { %220 = vmatprep.subr.mxu0 %v336_v0  ;;  %v182_v33 = vmul.f32 %v181_v31, %v61_v17 }
  0x2d   :  { %v155_v24 = vld [vmem:[#allocation2] sm:$0xff] }
  0x2e   :  { %221 = vmatpush3.xpose.msra.mxu0 %v75_v3  ;;  %v162_v36 = vld [vmem:[#allocation3] sm:$0xff] }
  0x2f   :  { %222 = vmatprep.subr.mxu0 %v336_v0 }
  0x32   :  { %223 = vmatpush3.xpose.msra.mxu0 %v74_v4 }
  0x33   :  { %224 = vmatprep.subr.mxu0 %v336_v0 }
  0x36   :  { %225 = vmatpush3.xpose.msra.mxu0 %v73_v5 }
  0x37   :  { %226 = vmatprep.subr.mxu0 %v336_v0 }
  0x3a   :  { %227 = vmatpush3.xpose.msra.mxu0 %v72_v6 }
  0x3b   :  { %228 = vmatprep.subr.mxu0 %v336_v0 }
  0x3e   :  { %229 = vmatpush3.xpose.msra.mxu0 %v71_v7 }
  0x3f   :  { %230 = vmatprep.subr.mxu0 %v336_v0 }
  0x42   :  { %231 = vmatpush3.xpose.msra.mxu0 %v70_v8 }
  0x43   :  { %232 = vmatprep.subr.mxu0 %v336_v0 }
  0x46   :  { %233 = vmatpush3.xpose.msra.mxu0 %v69_v9 }
  0x47   :  { %234 = vmatprep.subr.mxu0 %v336_v0 }
  0x4a   :  { %235 = vmatpush3.xpose.msra.mxu0 %v68_v10 }
  0x4b   :  { %236 = vmatprep.subr.mxu0 %v336_v0 }
  0x4e   :  { %237 = vmatpush3.xpose.msra.mxu0 %v67_v11 }
  0x4f   :  { %238 = vmatprep.subr.mxu0 %v336_v0 }
  0x52   :  { %239 = vmatpush3.xpose.msra.mxu0 %v66_v12 }
  0x53   :  { %240 = vmatprep.subr.mxu0 %v336_v0 }
  0x56   :  { %241 = vmatpush3.xpose.msra.mxu0 %v65_v13 }
  0x57   :  { %242 = vmatprep.subr.mxu0 %v336_v0 }
  0x5a   :  { %243 = vmatpush3.xpose.msra.mxu0 %v64_v14 }
  0x5b   :  { %244 = vmatprep.subr.mxu0 %v336_v0 }
  0x5e   :  { %245 = vmatpush3.xpose.msra.mxu0 %v63_v15 }
  0x5f   :  { %246 = vmatprep.subr.mxu0 %v336_v0 }
  0x62   :  { %247 = vmatpush3.xpose.msra.mxu0 %v62_v16 }
  0x65   :  { %249 = vmatmul.mubr.f32.vlgmr.msra.gmra.mxu0 %v61_v17 }
 0x125   :  { %v151_v20 = vpop.f32.mrf.mxu0 }
 0x126   :  { %v152_v21 = vadd.f32 %v198_v19, %v151_v20 }
 0x127   :  { %v250_v22 = vpop.f32.mrf.mxu0 }
 0x128   :  { %156 = vmax.xlane.f32.xlu0 %v152_v21 }
 0x1b1   :  { %v157_v25 = vpop.xlane.xlu0 %156 }
 0x1b2   :  { %v158_v26 = vmax.f32 %v155_v24, %v157_v25 }
 0x1b4   :  { %v159_v27 = vsub.f32 %v155_v24, %v158_v26  ;;  %177 = vst.msk [vmem:[#allocation2] sm:$0xff] %vm58_vm1, %v158_v26  ;;  %166 = vperm.xlu0 %260, %v158_v26  }
 0x1b6   :  { %v160_v34 = vmul.f32 1.442695, %v159_v27 }
 0x1bb   :  { %v185_v44 = vld [vmem:[#allocation2] sm:$0xff] }
 0x22f   :  { %v167_v28 = vpop.permute.xlu0 %166 }
 0x230   :  { %v169_v29 = vsub.f32 %v152_v21, %v167_v28 }
 0x232   :  { %v170_v30 = vmul.f32 1.442695, %v169_v29 }
 0x234   :  { %261 = vpow2.f32 %v170_v30 }
 0x235   :  { %263 = vpow2.f32 %v160_v34 }
 0x241   :  { %v262_v32 = vpop.eup %261 }
 0x242   :  { %172 = vadd.xlane.f32.xlu1 %v262_v32  ;;  %v264_v35 = vpop.eup %263 }
 0x243   :  { %v163_v37 = vmul.f32 %v264_v35, %v162_v36 }
 0x246   :  { %183 = vadd.xlane.f32.xlu1 %v182_v33 }
 0x2cb   :  { %v173_v38 = vpop.xlane.xlu1 %172 }
 0x2cc   :  { %v174_v39 = vadd.f32 %v173_v38, %v163_v37 }
 0x2ce   :  { %176 = vst.msk [vmem:[#allocation3] sm:$0xff] %vm58_vm1, %v174_v39 }
 0x2cf   :  { %v184_v43 = vpop.xlane.xlu1 %183 }
 0x2d5   :  { %v186_v40 = vld [vmem:[#allocation3] sm:$0xff] }
 0x2d6   :  { %265 = vlog2.f32 %v186_v40 }
 0x2e3   :  { %v266_v41 = vpop.eup %265 }
 0x2e4   :  { %v188_v42 = vmul.f32 0.6931472, %v266_v41 }
 0x2e6   :  { %v189_v45 = vadd.f32 %v188_v42, %v185_v44 }
 0x2e8   :  { %v190_v46 = vsub.f32 %v189_v45, %v184_v43 }
 0x2ea   :  { %191 = vst.msk [vmem:[%s389_s4] sm:$0xff] %vm58_vm1, %v190_v46 }
 0x2eb   :  { %196 = vsyncpa [#allocation5], 1 }
 0x2ec   :  { %197 = vsyncpa [#allocation7], 1 }

</bundles_post_ra>
